<compile_context>
chip_gen: v6e
topology: v6e:2x2x1
jax: 0.10.0
libtpu: 0.0.40
codegen_flags: <defaults>
</compile_context>

<pallas_src>
import functools
import math

import jax
import jax.numpy as jnp
from jax.experimental import pallas as pl
from jax.experimental.pallas import tpu as pltpu


# ----------------------------------------------------------------------------
# small helpers
# ----------------------------------------------------------------------------
def _round_up(x, m):
    return ((x + m - 1) // m) * m


def _pick_div_tile(total, candidates):
    for t in candidates:
        if t <= total and total % t == 0:
            return t
    return total


# ----------------------------------------------------------------------------
# shared in-kernel helpers
# ----------------------------------------------------------------------------
def _gn_silu_rows(x, gamma, beta, groups, eps):
    # x: (C, HW) for one batch element; gamma/beta: (C, 1).
    # Centered two-pass GroupNorm (avoids E[x^2]-E[x]^2 cancellation) + SiLU.
    c, hw = x.shape
    cpg = c // groups
    if cpg > 1:
        n = cpg * hw
        s1 = jnp.sum(x, axis=1, keepdims=True)                    # (C, 1)
        mean_g = jnp.sum(s1.reshape(groups, cpg), axis=1, keepdims=True) / n
        mean = jnp.broadcast_to(mean_g, (groups, cpg)).reshape(c, 1)
        d = x - mean
        s2 = jnp.sum(d * d, axis=1, keepdims=True)
        var_g = jnp.sum(s2.reshape(groups, cpg), axis=1, keepdims=True) / n
        inv = jnp.broadcast_to(jax.lax.rsqrt(var_g + eps),
                               (groups, cpg)).reshape(c, 1)
    else:  # groups == channels (toy config): per-channel stats directly
        mean = jnp.mean(x, axis=1, keepdims=True)
        d = x - mean
        var = jnp.mean(d * d, axis=1, keepdims=True)
        inv = jax.lax.rsqrt(var + eps)
    y = d * inv * gamma + beta
    return y * jax.nn.sigmoid(y)                                  # SiLU


# ----------------------------------------------------------------------------
# Pallas kernels
# ----------------------------------------------------------------------------
def _gn_silu_kernel(x_ref, gb_ref, o_ref, *, groups, eps):
    # x_ref: (1, C, HW) block, gb_ref: (C, 2) packed gamma|beta.
    x = x_ref[0]
    o_ref[0] = _gn_silu_rows(x, gb_ref[:, 0:1], gb_ref[:, 1:2], groups, eps)


def _spectral_mix_kernel(xr_ref, xi_ref, wr_ref, ws_ref, wd_ref,
                         or_ref, oi_ref, *, cin):
    # Half-spectrum complex channel mixing over one lane-dense HWr tile:
    #   out[o, f] = sum_i X[i, f] * W[o, i, f]
    # Gauss 3-multiply with precomputed ws = wr+wi, wd = wi-wr (bf16 weights,
    # f32 accumulation).  Cin is blocked by 8 so x loads are full sublane tiles.
    xr = xr_ref[0]                                   # (Cin, T) f32
    xi = xi_ref[0]
    cout, t = or_ref.shape[1], or_ref.shape[2]
    acc_r = jnp.zeros((cout, t), jnp.float32)
    acc_i = jnp.zeros((cout, t), jnp.float32)
    for i0 in range(0, cin, 8):                      # small static loop
        nb = min(8, cin - i0)
        xs = xr[i0:i0 + nb][:, None, :]              # (nb, 1, T)
        xis = xi[i0:i0 + nb][:, None, :]
        wrb = wr_ref[i0:i0 + nb].astype(jnp.float32)  # (nb, Cout, T)
        wsb = ws_ref[i0:i0 + nb].astype(jnp.float32)
        wdb = wd_ref[i0:i0 + nb].astype(jnp.float32)
        k1 = wrb * (xs + xis)                        # wr*(xr+xi)
        acc_r = acc_r + jnp.sum(k1 - wsb * xis, axis=0)   # wr*xr - wi*xi
        acc_i = acc_i + jnp.sum(k1 + wdb * xs, axis=0)    # wr*xi + wi*xr
    or_ref[0] = acc_r
    oi_ref[0] = acc_i


def _attn_block_kernel(x_ref, gb_ref, wqkv_ref, wo_ref, o_ref,
                       *, groups, eps, scale):
    # One batch element per grid step (parallel axis):
    #   GroupNorm+SiLU -> fused QKV matmul -> softmax attention over channels
    #   -> output projection -> residual add.
    x = x_ref[0]                                     # (C, S) f32
    n = _gn_silu_rows(x, gb_ref[:, 0:1], gb_ref[:, 1:2], groups, eps)
    s_dim = x.shape[1]
    qkv = jnp.dot(n.astype(jnp.bfloat16), wqkv_ref[...],
                  preferred_element_type=jnp.float32)        # (C, 3S)
    q = qkv[:, :s_dim].astype(jnp.bfloat16)
    k = qkv[:, s_dim:2 * s_dim].astype(jnp.bfloat16)
    v = qkv[:, 2 * s_dim:].astype(jnp.bfloat16)
    sc = jnp.dot(q, k.T, preferred_element_type=jnp.float32) * scale
    sc = sc - jnp.max(sc, axis=-1, keepdims=True)
    p = jnp.exp(sc)
    p = p * pl.reciprocal(jnp.sum(p, axis=-1, keepdims=True), approx=True)
    a = jnp.dot(p.astype(jnp.bfloat16), v, preferred_element_type=jnp.float32)
    proj = jnp.dot(a.astype(jnp.bfloat16), wo_ref[...],
                   preferred_element_type=jnp.float32)
    o_ref[0] = x + proj                              # fused residual add


def _fc_reparam_kernel(x_ref, wm_ref, wl_ref, b_ref, noise_ref,
                       z_ref, mu_ref, lv_ref):
    # Fused Linear + chunk + clamp + exp + reparametrize, tiled on latent cols.
    x = x_ref[...].astype(jnp.bfloat16)              # (B, Din)
    mu = jnp.dot(x, wm_ref[...], preferred_element_type=jnp.float32) + b_ref[0:1, :]
    lv = jnp.dot(x, wl_ref[...], preferred_element_type=jnp.float32) + b_ref[1:2, :]
    lv = jnp.clip(lv, -30.0, 20.0)
    std = jnp.exp(0.5 * lv)                          # exp(logvar).sqrt()
    z_ref[...] = (mu + noise_ref[...] * std) * 0.18215
    mu_ref[...] = mu
    lv_ref[...] = lv


def _deconv_kernel(enc_ref, dec_ref, pp_ref, invw_ref, o_ref, *, groups, eps_gn):
    # Fused: GN+SiLU(encoder skip) + GN+SiLU(upsampled decoder) + combine with
    # precomputed 1/(w+eps) (shared across the batch grid axis) + bias.
    enc_n = _gn_silu_rows(enc_ref[0], pp_ref[:, 0:1], pp_ref[:, 1:2],
                          groups, eps_gn)
    dec_n = _gn_silu_rows(dec_ref[0], pp_ref[:, 2:3], pp_ref[:, 3:4],
                          groups, eps_gn)
    o_ref[0] = (enc_n + dec_n) * invw_ref[...] + pp_ref[:, 4:5]


# ----------------------------------------------------------------------------
# Pallas wrappers
# ----------------------------------------------------------------------------
def gn_silu(x, gamma, beta, groups, eps=1e-5):
    b, c, h, w = x.shape
    hw = h * w
    gb = jnp.stack([gamma, beta], axis=1)            # (C, 2) packed operand
    out = pl.pallas_call(
        functools.partial(_gn_silu_kernel, groups=groups, eps=eps),
        out_shape=jax.ShapeDtypeStruct((b, c, hw), jnp.float32),
        grid=(b,),
        in_specs=[
            pl.BlockSpec((1, c, hw), lambda i: (i, 0, 0)),
            pl.BlockSpec((c, 2), lambda i: (0, 0)),
        ],
        out_specs=pl.BlockSpec((1, c, hw), lambda i: (i, 0, 0)),
        compiler_params=pltpu.CompilerParams(dimension_semantics=("parallel",)),
    )(x.reshape(b, c, hw), gb)
    return out.reshape(b, c, h, w)


def fourier_conv2d(x, wr_t, ws_t, wd_t, bias=None, residual=None):
    # TODO(synk): rFFT / irFFT have no Pallas equivalent; done in plain JAX.
    b, cin, h, w = x.shape
    cout = wr_t.shape[1]
    wh = w // 2 + 1
    hwr = h * wh
    hwr_pad = wr_t.shape[2]                          # weights stored padded
    xf = jnp.fft.rfft2(x)
    xr = jnp.real(xf).reshape(b, cin, hwr).astype(jnp.float32)
    xi = jnp.imag(xf).reshape(b, cin, hwr).astype(jnp.float32)
    if hwr_pad > hwr:                                # lane-dense (128-mult) pad
        pad = hwr_pad - hwr
        xr = jnp.pad(xr, ((0, 0), (0, 0), (0, pad)))
        xi = jnp.pad(xi, ((0, 0), (0, 0), (0, pad)))
    tile = _pick_div_tile(hwr_pad, (2048, 1024, 512, 256, 128))
    n_t = hwr_pad // tile
    yr, yi = pl.pallas_call(
        functools.partial(_spectral_mix_kernel, cin=cin),
        out_shape=(
            jax.ShapeDtypeStruct((b, cout, hwr_pad), jnp.float32),
            jax.ShapeDtypeStruct((b, cout, hwr_pad), jnp.float32),
        ),
        grid=(b, n_t),
        in_specs=[
            pl.BlockSpec((1, cin, tile), lambda i, t: (i, 0, t)),
            pl.BlockSpec((1, cin, tile), lambda i, t: (i, 0, t)),
            pl.BlockSpec((cin, cout, tile), lambda i, t: (0, 0, t)),
            pl.BlockSpec((cin, cout, tile), lambda i, t: (0, 0, t)),
            pl.BlockSpec((cin, cout, tile), lambda i, t: (0, 0, t)),
        ],
        out_specs=(
            pl.BlockSpec((1, cout, tile), lambda i, t: (i, 0, t)),
            pl.BlockSpec((1, cout, tile), lambda i, t: (i, 0, t)),
        ),
        compiler_params=pltpu.CompilerParams(
            dimension_semantics=("parallel", "parallel"),
            vmem_limit_bytes=48 * 1024 * 1024),
    )(xr, xi, wr_t, ws_t, wd_t)
    yr = yr[:, :, :hwr]
    yi = yi[:, :, :hwr]
    yf = (yr + 1j * yi).reshape(b, cout, h, wh)
    y = jnp.fft.irfft2(yf, s=(h, w)).astype(jnp.float32)
    # bias + residual folded into one XLA elementwise epilogue (fused w/ irfft).
    if bias is not None:
        y = y + bias.reshape(1, cout, 1, 1)
    if residual is not None:
        y = y + residual
    return y


def attention_block(x, p, groups):
    b, c, h, w = x.shape
    s = h * w
    scale = 1.0 / math.sqrt(s)
    gb = jnp.stack([p["gn_g"], p["gn_b"]], axis=1)   # (C, 2)
    out = pl.pallas_call(
        functools.partial(_attn_block_kernel, groups=groups, eps=1e-5,
                          scale=scale),
        out_shape=jax.ShapeDtypeStruct((b, c, s), jnp.float32),
        grid=(b,),
        in_specs=[
            pl.BlockSpec((1, c, s), lambda i: (i, 0, 0)),
            pl.BlockSpec((c, 2), lambda i: (0, 0)),
            pl.BlockSpec((s, 3 * s), lambda i: (0, 0)),
            pl.BlockSpec((s, s), lambda i: (0, 0)),
        ],
        out_specs=pl.BlockSpec((1, c, s), lambda i: (i, 0, 0)),
        compiler_params=pltpu.CompilerParams(
            dimension_semantics=("parallel",),
            vmem_limit_bytes=48 * 1024 * 1024),
    )(x.reshape(b, c, s), gb, p["wqkv"], p["wo"])
    return out.reshape(b, c, h, w)


def fc_reparam(flat, w_mu, w_lv, b2, noise):
    b, din = flat.shape
    latent = w_mu.shape[1]
    tl = next((t for t in (512, 256, 128) if 2 * t <= latent and latent % t == 0),
              latent)
    nt = latent // tl
    return pl.pallas_call(
        _fc_reparam_kernel,
        out_shape=(
            jax.ShapeDtypeStruct((b, latent), jnp.float32),
            jax.ShapeDtypeStruct((b, latent), jnp.float32),
            jax.ShapeDtypeStruct((b, latent), jnp.float32),
        ),
        grid=(nt,),
        in_specs=[
            pl.BlockSpec((b, din), lambda t: (0, 0)),
            pl.BlockSpec((din, tl), lambda t: (0, t)),
            pl.BlockSpec((din, tl), lambda t: (0, t)),
            pl.BlockSpec((2, tl), lambda t: (0, t)),
            pl.BlockSpec((b, tl), lambda t: (0, t)),
        ],
        out_specs=(
            pl.BlockSpec((b, tl), lambda t: (0, t)),
            pl.BlockSpec((b, tl), lambda t: (0, t)),
            pl.BlockSpec((b, tl), lambda t: (0, t)),
        ),
        compiler_params=pltpu.CompilerParams(dimension_semantics=("parallel",)),
    )(flat, w_mu, w_lv, b2, noise)


def upsampling_fourier_deconv(x, e_t, p, groups, eps=1e-6):
    x_up = upsample_bilinear_2x(x)
    b, c, h, w = x_up.shape
    hw = h * w
    # TODO(synk): matches reference 1/(w+eps); values of w near -eps can blow up.
    inv_w = (1.0 / (p["w_spec"] + eps)).astype(jnp.float32)       # (C, HW), shared
    pp = jnp.stack([p["enc_gn_g"], p["enc_gn_b"], p["dec_gn_g"], p["dec_gn_b"],
                    p["bias"].reshape(c)], axis=1)                # (C, 5) packed
    out = pl.pallas_call(
        functools.partial(_deconv_kernel, groups=groups, eps_gn=1e-5),
        out_shape=jax.ShapeDtypeStruct((b, c, hw), jnp.float32),
        grid=(b,),
        in_specs=[
            pl.BlockSpec((1, c, hw), lambda i: (i, 0, 0)),
            pl.BlockSpec((1, c, hw), lambda i: (i, 0, 0)),
            pl.BlockSpec((c, 5), lambda i: (0, 0)),
            pl.BlockSpec((c, hw), lambda i: (0, 0)),   # no B-fold broadcast
        ],
        out_specs=pl.BlockSpec((1, c, hw), lambda i: (i, 0, 0)),
        compiler_params=pltpu.CompilerParams(dimension_semantics=("parallel",)),
    )(e_t.reshape(b, c, hw), x_up.reshape(b, c, hw), pp, inv_w)
    return out.reshape(b, c, h, w)


# ----------------------------------------------------------------------------
# plain-JAX glue (pooling / upsampling / FFT plumbing)
# ----------------------------------------------------------------------------
def maxpool2(x):
    b, c, h, w = x.shape
    return x.reshape(b, c, h // 2, 2, w // 2, 2).max(axis=(3, 5))


def upsample_bilinear_2x(x):
    # nn.UpsamplingBilinear2d(scale_factor=2) == bilinear, align_corners=True
    # TODO(synk): gather-based resampling stays in plain JAX (no Pallas gather).
    b, c, h, w = x.shape
    ho, wo = 2 * h, 2 * w
    ys = jnp.linspace(0.0, h - 1.0, ho)
    xs = jnp.linspace(0.0, w - 1.0, wo)
    y0 = jnp.floor(ys).astype(jnp.int32)
    y1 = jnp.minimum(y0 + 1, h - 1)
    wy = (ys - y0.astype(jnp.float32)).reshape(1, 1, ho, 1)
    x0 = jnp.floor(xs).astype(jnp.int32)
    x1 = jnp.minimum(x0 + 1, w - 1)
    wx = (xs - x0.astype(jnp.float32)).reshape(1, 1, 1, wo)
    a = x[:, :, y0, :][:, :, :, x0]
    bq = x[:, :, y0, :][:, :, :, x1]
    cq = x[:, :, y1, :][:, :, :, x0]
    dq = x[:, :, y1, :][:, :, :, x1]
    top = a * (1.0 - wx) + bq * wx
    bot = cq * (1.0 - wx) + dq * wx
    return top * (1.0 - wy) + bot * wy


# ----------------------------------------------------------------------------
# module blocks
# ----------------------------------------------------------------------------
def residual_block(x, p, groups):
    h1 = gn_silu(x, p["gn1_g"], p["gn1_b"], groups)
    h1 = fourier_conv2d(h1, p["conv1_wr"], p["conv1_ws"], p["conv1_wd"],
                        bias=p["conv1_b"])
    h2 = gn_silu(h1, p["gn2_g"], p["gn2_b"], groups)
    # in_channels == out_channels -> residue = Identity; folded into epilogue
    return fourier_conv2d(h2, p["conv2_wr"], p["conv2_ws"], p["conv2_wd"],
                          bias=p["conv2_b"], residual=x)


def downsampling_fourier_conv(x, p, groups):
    h = gn_silu(x, p["gn_g"], p["gn_b"], groups)
    h = maxpool2(h)      # TODO(synk): fuse into the GN kernel (lane-strided)
    return fourier_conv2d(h, p["conv_wr"], p["conv_ws"], p["conv_wd"], None)


def fourier_vae_forward(params, x, noise_key):
    groups = params["groups"]
    # ---------------- Encoder ----------------
    h = residual_block(x, params["enc"]["res"], groups)
    h = attention_block(h, params["enc"]["attn"], groups)
    skip = h
    h = downsampling_fourier_conv(h, params["enc"]["down"], groups)
    b, c, hh, ww = h.shape
    flat = h.reshape(b, c * hh * ww)
    noise = jax.random.normal(noise_key, (b, c * hh * ww), jnp.float32)
    z, mu, logvar = fc_reparam(flat, params["enc"]["fc_w_mu"],
                               params["enc"]["fc_w_lv"],
                               params["enc"]["fc_b2"], noise)
    z = z.reshape(b, c, hh, ww)
    # ---------------- Decoder ----------------
    d = residual_block(z, params["dec"]["res"], groups)
    d = attention_block(d, params["dec"]["attn"], groups)
    d = upsampling_fourier_deconv(d, skip, params["dec"]["up"], groups, 1e-6)
    return d, mu, logvar


# ----------------------------------------------------------------------------
# deterministic parameter initialization
# ----------------------------------------------------------------------------
def init_params(key, channels=8, height=16, width=16):
    # TODO(synk): original hard-codes GroupNorm(32, channels); with small
    # synthetic channel counts we use min(32, channels) groups.
    groups = min(32, channels)
    counter = [0]

    def nxt():
        counter[0] += 1
        return jax.random.fold_in(key, counter[0])

    def nrm(shape, std=0.02):
        return (std * jax.random.normal(nxt(), shape, jnp.float32)).astype(jnp.float32)

    def kaiming_fft(cin, cout, h, w):
        # real kaiming kernel -> half-spectrum (rfft2), stored mix-ready as
        # bf16 (Cin, Cout, HWr_pad) with Gauss companions ws=wr+wi, wd=wi-wr,
        # lane-padded to a multiple of 128.
        fan_in = cin * h * w
        gain = math.sqrt(2.0 / (1.0 + 5.0))  # kaiming_normal_ with a = sqrt(5)
        std = gain / math.sqrt(fan_in)
        wgt = nrm((cout, cin, h, w), std)
        wf = jnp.fft.rfft2(wgt)
        wr = jnp.real(wf).astype(jnp.float32)
        wi = jnp.imag(wf).astype(jnp.float32)
        hwr = h * (w // 2 + 1)
        hwr_pad = _round_up(hwr, 128)

        def to_mix(a):
            a = jnp.transpose(a, (1, 0, 2, 3)).reshape(cin, cout, hwr)
            if hwr_pad > hwr:
                a = jnp.pad(a, ((0, 0), (0, 0), (0, hwr_pad - hwr)))
            return a.astype(jnp.bfloat16)

        return to_mix(wr), to_mix(wr + wi), to_mix(wi - wr)

    def gn(c):
        return jnp.ones((c,), jnp.float32), jnp.zeros((c,), jnp.float32)

    def res_block(c, h, w):
        g1, b1 = gn(c)
        g2, b2 = gn(c)
        wr1, ws1, wd1 = kaiming_fft(c, c, h, w)
        wr2, ws2, wd2 = kaiming_fft(c, c, h, w)
        return dict(
            gn1_g=g1, gn1_b=b1,
            conv1_wr=wr1, conv1_ws=ws1, conv1_wd=wd1, conv1_b=nrm((c,)),
            gn2_g=g2, gn2_b=b2,
            conv2_wr=wr2, conv2_ws=ws2, conv2_wd=wd2, conv2_b=nrm((c,)),
        )

    def attn_block(c, s):
        g, bb = gn(c)
        std = 1.0 / math.sqrt(s)
        return dict(
            gn_g=g, gn_b=bb,
            wqkv=nrm((s, 3 * s), std).astype(jnp.bfloat16),   # fused Q|K|V
            wo=nrm((s, s), std).astype(jnp.bfloat16),
        )

    c, h, w = channels, height, width
    h2, w2 = h // 2, w // 2

    dwr, dws, dwd = kaiming_fft(c, c, h2, w2)
    gd, bd = gn(c)
    latent = c * h2 * w2
    fc_w = nrm((latent, 2 * latent), 1.0 / math.sqrt(latent))
    fc_b = jnp.zeros((2 * latent,), jnp.float32)
    enc = dict(
        res=res_block(c, h, w),
        attn=attn_block(c, h * w),
        down=dict(gn_g=gd, gn_b=bd, conv_wr=dwr, conv_ws=dws, conv_wd=dwd),
        fc_w_mu=fc_w[:, :latent].astype(jnp.bfloat16),
        fc_w_lv=fc_w[:, latent:].astype(jnp.bfloat16),
        fc_b2=jnp.stack([fc_b[:latent], fc_b[latent:]], axis=0),  # (2, latent)
    )

    # TODO(synk): original deconv weight (C, C, H, W) cannot broadcast against
    # (B, C, H, W); we use a per-channel (C, H*W) spectral weight (real part).
    up_w = jnp.real(jnp.fft.fft2(nrm((c, h, w),
                                     math.sqrt(1.0 / 3.0) / math.sqrt(h * w))))
    ge_g, ge_b = gn(c)
    gdd_g, gdd_b = gn(c)
    dec = dict(
        res=res_block(c, h2, w2),
        attn=attn_block(c, h2 * w2),
        up=dict(
            enc_gn_g=ge_g, enc_gn_b=ge_b,
            dec_gn_g=gdd_g, dec_gn_b=gdd_b,
            w_spec=up_w.reshape(c, h * w).astype(jnp.float32),
            bias=nrm((1, c, 1, 1)),
        ),
    )
    return dict(groups=groups, enc=enc, dec=dec)


# ----------------------------------------------------------------------------
if __name__ == "__main__":
    key = jax.random.PRNGKey(0)
    k_params, k_input, k_noise = jax.random.split(key, 3)

    B, C, H, W = 2, 8, 16, 16          # small synthetic shapes (orig: 256x256)
    params = init_params(k_params, channels=C, height=H, width=W)
    x = jax.random.normal(k_input, (B, C, H, W), jnp.float32)

    out, mu, logvar = fourier_vae_forward(params, x, k_noise)
    jax.block_until_ready((out, mu, logvar))

    assert out.shape == (B, C, H, W)
    assert mu.shape == (B, C * (H // 2) * (W // 2))
    assert logvar.shape == mu.shape
    print("KERNEL_OK")
</pallas_src>

<mosaic_0001>
module attributes {stable_mosaic.version = 11 : i64} {
  func.func @_gn_silu_kernel(%arg0: i32, %arg1: memref<1x8x256xf32, #tpu.memory_space<vmem>>, %arg2: memref<8x2xf32, #tpu.memory_space<vmem>>, %arg3: memref<1x8x256xf32, #tpu.memory_space<vmem>>) attributes {dimension_semantics = [#tpu.dimension_semantics<parallel>], iteration_bounds = array<i64: 2>, scalar_prefetch = 0 : i64, scratch_operands = 0 : i64, tpu.core_type = #tpu.core_type<tc>, window_params = [{transform_indices = @transform_0, window_bounds = array<i64: 1, 8, 256>}, {pipeline_mode = #tpu.pipeline_mode<synchronous>, transform_indices = @transform_1, window_bounds = array<i64: 8, 2>}, {transform_indices = @transform_2, window_bounds = array<i64: 1, 8, 256>}]} {
    %c0 = arith.constant 0 : index
    %c0_0 = arith.constant 0 : index
    %c0_1 = arith.constant 0 : index
    %0 = vector.load %arg1[%c0, %c0_0, %c0_1] : memref<1x8x256xf32, #tpu.memory_space<vmem>>, vector<1x8x256xf32>
    %1 = vector.shape_cast %0 : vector<1x8x256xf32> to vector<8x256xf32>
    %c0_2 = arith.constant 0 : index
    %c0_3 = arith.constant 0 : index
    %2 = vector.load %arg2[%c0_2, %c0_3] : memref<8x2xf32, #tpu.memory_space<vmem>>, vector<8x1xf32>
    %c0_4 = arith.constant 0 : index
    %c1 = arith.constant 1 : index
    %3 = vector.load %arg2[%c0_4, %c1] : memref<8x2xf32, #tpu.memory_space<vmem>>, vector<8x1xf32>
    %cst = arith.constant dense<0.000000e+00> : vector<8xf32>
    %4 = vector.multi_reduction <add>, %1, %cst [1] : vector<8x256xf32> to vector<8xf32>
    %5 = vector.shape_cast %4 : vector<8xf32> to vector<8x1xf32>
    %cst_5 = arith.constant 2.560000e+02 : f32
    %6 = vector.broadcast %cst_5 : f32 to vector<8x1xf32>
    %7 = arith.divf %5, %6 : vector<8x1xf32>
    %8 = vector.broadcast %7 : vector<8x1xf32> to vector<8x256xf32>
    %9 = arith.subf %1, %8 : vector<8x256xf32>
    %10 = arith.mulf %9, %9 : vector<8x256xf32>
    %cst_6 = arith.constant dense<0.000000e+00> : vector<8xf32>
    %11 = vector.multi_reduction <add>, %10, %cst_6 [1] : vector<8x256xf32> to vector<8xf32>
    %12 = vector.shape_cast %11 : vector<8xf32> to vector<8x1xf32>
    %cst_7 = arith.constant 2.560000e+02 : f32
    %13 = vector.broadcast %cst_7 : f32 to vector<8x1xf32>
    %14 = arith.divf %12, %13 : vector<8x1xf32>
    %cst_8 = arith.constant 9.99999974E-6 : f32
    %15 = vector.broadcast %cst_8 : f32 to vector<8x1xf32>
    %16 = arith.addf %14, %15 : vector<8x1xf32>
    %17 = math.rsqrt %16 : vector<8x1xf32>
    %18 = vector.broadcast %17 : vector<8x1xf32> to vector<8x256xf32>
    %19 = arith.mulf %9, %18 : vector<8x256xf32>
    %20 = vector.broadcast %2 : vector<8x1xf32> to vector<8x256xf32>
    %21 = arith.mulf %19, %20 : vector<8x256xf32>
    %22 = vector.broadcast %3 : vector<8x1xf32> to vector<8x256xf32>
    %23 = arith.addf %21, %22 : vector<8x256xf32>
    %24 = arith.negf %23 : vector<8x256xf32>
    %25 = math.exp %24 : vector<8x256xf32>
    %cst_9 = arith.constant 1.000000e+00 : f32
    %26 = vector.broadcast %cst_9 : f32 to vector<8x256xf32>
    %27 = arith.addf %26, %25 : vector<8x256xf32>
    %28 = arith.divf %26, %27 : vector<8x256xf32>
    %29 = arith.mulf %23, %28 : vector<8x256xf32>
    %c0_10 = arith.constant 0 : index
    %c0_11 = arith.constant 0 : index
    %c0_12 = arith.constant 0 : index
    %30 = vector.load %arg3[%c0_10, %c0_11, %c0_12] : memref<1x8x256xf32, #tpu.memory_space<vmem>>, vector<1x8x256xf32>
    %31 = vector.shape_cast %30 : vector<1x8x256xf32> to vector<8x256xf32>
    %32 = vector.shape_cast %29 : vector<8x256xf32> to vector<1x8x256xf32>
    tpu.vector_store %arg3[%c0_10, %c0_11, %c0_12], %32 {strides = array<i32>} : memref<1x8x256xf32, #tpu.memory_space<vmem>>, vector<1x8x256xf32>,
    return
  }
  func.func @transform_0(%arg0: i32) -> (i32, i32, i32) {
    %c0_i32 = arith.constant 0 : i32
    %c0_i32_0 = arith.constant 0 : i32
    %c0_i32_1 = arith.constant 0 : i32
    return %arg0, %c0_i32, %c0_i32_0 : i32, i32, i32
  }
  func.func @transform_1(%arg0: i32) -> (i32, i32) {
    %c0_i32 = arith.constant 0 : i32
    %c0_i32_0 = arith.constant 0 : i32
    %c0_i32_1 = arith.constant 0 : i32
    return %c0_i32, %c0_i32_0 : i32, i32
  }
  func.func @transform_2(%arg0: i32) -> (i32, i32, i32) {
    %c0_i32 = arith.constant 0 : i32
    %c0_i32_0 = arith.constant 0 : i32
    %c0_i32_1 = arith.constant 0 : i32
    return %arg0, %c0_i32, %c0_i32_0 : i32, i32, i32
  }
}

</mosaic_0001>

<bundles_post_ra>
// kernel: tpu_custom_call.1
= control target key start
LH: loop header
LB: loop body
LE: loop exit
PB: predicated region body
PF: predicated region fallthrough
CT: control target
= control target key end

     0   :  { %7 = vsyncpa [#allocation3], 0  ;;  %s640_s0 = inlined_call_operand.hbm [shape: f32[2,8,256], index: 0, kind: input, shape index: {}]   ;;  %s641_s1 = inlined_call_operand.vmem [shape: f32[8,2], index: 1, kind: input, shape index: {}]   ;;  %s642_s2 = inlined_call_operand.hbm [shape: f32[2,8,256], index: 2, kind: output, shape index: {}]  }
   0x1   :  { %9 = vsyncpa [#allocation3 + $0x1], 0 }
   0x2   :  { %10 = vsyncpa [#allocation4], 0 }
   0x3   :  { %12 = vsyncpa [#allocation4 + $0x1], 0  ;;  %s486_s9 = smov 0   ;;  %s488_s10 = smov 0  }
   0x4   :  { %s490_s11 = smov 0   ;;  %s492_s12 = smov 0  }
   0x5 LB: > { %s507_s13 = sadd.s32 4294967295, %s465_s12   ;;  %s294_s14 = sadd.s32 4294967294, %s465_s12   ;;  %s465_s12 = sphi %s492_s12, %s659_s12   ;;  %s461_s11 = sphi %s490_s11, %s658_s11   ;;  %s457_s10 = sphi %s488_s10, %s657_s10   ;;  %s453_s9 = sphi %s486_s9, %s656_s9  }
   0x6   : > { %s511_s15 = sadd.s32 1, %s465_s12   ;;  %s25_s16 = sadd.s32 1, %s461_s11 }
   0x7   : > { %s22_s17 = ssub.s32 %s465_s12, %s511_s15  ;;  %p32_p0 = scmp.ne.s32.totalorder %s461_s11, %s457_s10 }
   0x8   : > { %p23_p1 = scmp.eq.s32.totalorder %s22_s17, 0  ;;  %p33_p2 = scmp.eq.s32.totalorder %s465_s12, 0 }
   0x9   : > { %p38_p3 = scmp.ne.s32.totalorder %s457_s10, %s453_s9  ;;  %p39_p4 = scmp.eq.s32.totalorder %s507_s13, 0 }
   0xa   : > { %s523_s18 = scalar_select %p23_p1, %s461_s11, %s25_s16  }
   0xb   : > { %p525_p5 = por %p33_p2, %p32_p0  ;;  %p529_p6 = por %p39_p4, %p38_p3 }
   0xc   : > { %p83_p7 = scmp.eq.s32.totalorder %s507_s13, 1  ;;  %p89_p8 = scmp.eq.s32.totalorder %s294_s14, 1 }
   0xd   : > { %s646_s20 = scalar_select %p529_p6, 1, 0 }
   0xe   : > { %p324_p10 = scmp.lt.s32.totalorder %s465_s12, 2  ;;  %p536_p11 = por %p83_p7, %p32_p0 }
   0xf   : > { %p540_p12 = por %p89_p8, %p38_p3  ;;  %s112_s23 = sand.u32 1, %s461_s11  }
  0x10   : > { %s647_s21 = scalar_select %p536_p11, 1, 0 }
  0x11   : > { %s648_s22 = scalar_select %p540_p12, 1, 0 }
  0x12   : > { %s310_s24 = sshll.u32 %s465_s12, 8  ;;  %s297_s25 = sshll.u32 %s112_s23, 4 }
  0x13   : > { %s549_s28 = scalar_lea.hbm %s640_s0, %s310_s24  ;;  %s116_s29 = scalar_lea.vmem [#allocation2], %s297_s25 }
  0x14   : > { %s124_s30 = sshll.u32 %s116_s29, 4  ;;  %p553_p13 = pnand %p324_p10, %p525_p5  ;;  %s557_s30 = int_to_ptr.vmem [resolvable:$true] %s124_s30 }
  0x15   : > { %s113_s4 = scalar_lea.sflag [#allocation3], %s112_s23  ;;  %s373_s5 = scalar_lea.hbm %s549_s28, 256 }
  0x16   : > { %p374_p2 = scmp.ne.s32.totalorder %s549_s28, %s373_s5  ;;  %p375_p3 = pneg %p553_p13 }
  0x17   : > { %s378_s8 = scalar_lea.hbm %s640_s0, 512  ;;  %p379_p5 = scmp.lt.s32.totalorder %s549_s28, %s640_s0 }
  0x18   : > { %p376_p4 = pnand %p375_p3, %p374_p2  ;;  %p380_p8 = scmp.lt.s32.totalorder %s378_s8, %s373_s5 }
  0x1a   : > { %p377_p7 = pneg %p376_p4  ;;  %p381_p10 = por %p380_p8, %p379_p5 }
  0x1c   : > { %p382_p9 = pnand %p381_p10, %p377_p7 }
  0x1e   : > { %385 = shalt.err (!%p382_p9)
}
  0x1f   : > { %s386_s17 = scalar_lea.vmem %s557_s30, 256  ;;  %s467_s19 = smov [#allocation2]  }
  0x20   : > { %p387_p0 = scmp.ne.s32.totalorder %s557_s30, %s386_s17  ;;  %s391_s23 = sshll.u32 %s467_s19, 4  ;;  %s392_s23 = int_to_ptr.vmem [resolvable:$false] %s391_s23 }
  0x21   : > { %s393_s24 = scalar_lea.vmem %s392_s23, 512  ;;  %p394_p4 = scmp.lt.s32.totalorder %s557_s30, %s392_s23 }
  0x22   : > { %p389_p1 = pnand %p387_p0, %p375_p3  ;;  %p395_p12 = scmp.lt.s32.totalorder %s393_s24, %s386_s17 }
  0x24   : > { %p390_p2 = pneg %p389_p1  ;;  %p396_p11 = por %p395_p12, %p394_p4 }
  0x26   : > { %p397_p6 = pnand %p396_p11, %p390_p2 }
  0x28   : > { %400 = shalt.err (!%p397_p6)
}
  0x29   : > { %319 = dma.hbm_to_vmem [thread:$0]  (!%p553_p13), %s549_s28, 256, %s557_s30, %s113_s4  }
  0x2a   : > { %p650_p9 = scmp.lt.s32.totalorder %s465_s12, 3  ;;  %p651_p7 = scmp.ge.s32.totalorder %s465_s12, 1 }
  0x2c   : > { %p130_p0 = pnand %p651_p7, %p650_p9 }
  0x2d   : > { %s584_s25 = sand.u32 (!%p130_p0), 1, %s457_s10   ;;  %p652_p6 = scmp.ne.s32.totalorder (!%p130_p0), %s646_s20, 0 }
  0x2e   : > { %133 = sbr.rel (%p130_p0) target bundleno = 411 (0x19b), region = 28  ;;  %s301_s26 = sshll.u32 (!%p130_p0), %s584_s25, 4 }
  0x2f   : > { %s136_s27 = scalar_lea.sflag (!%p130_p0), [#allocation3], %s584_s25  ;;  %s139_s29 = scalar_lea.vmem (!%p130_p0), [#allocation2], %s301_s26 }
  0x33   : > { %444 = dma.done.wait (%p652_p6), %s136_s27, 256  }
  0x34   : > { %446 = vsyncadd (%p652_p6), %s136_s27, 4294967040  ;;  %v160_v0 = vld [vmem:[%s139_s29] sm:$0xff]  ;;  %v161_v1 = vld [vmem:[%s139_s29 + $0x8] sm:$0xff]  ;;  %v468_v4 = vmov 0   ;;  %v469_v5 = vmov 1   ;;  %s311_s20 = sshll.u32 %s507_s13, 8 }
  0x35   : > { %v163_v2 = vadd.f32 %v161_v1, %v160_v0  ;;  %v162_v3 = vld [vmem:[%s641_s1] sm:$0xff]  ;;  %360 = vset.pattern.permute.xlu1 %v468_v4  ;;  %362 = vset.pattern.permute.xlu0 %v469_v5  ;;  %s159_s3 = scalar_lea.vmem [#allocation5], %s301_s26  ;;  %s603_s7 = scalar_lea.hbm %s642_s2, %s311_s20 }
  0x36   : > { %182 = vperm.xlu1 %360, %v162_v3   ;;  %s224_s4 = sshll.u32 %s159_s3, 4  ;;  %s210_s8 = scalar_lea.sflag [#allocation4], %s584_s25  ;;  %s225_s4 = int_to_ptr.vmem [resolvable:$true] %s224_s4 }
  0x37   : > { %164 = vadd.xlane.f32.xlu0 %v163_v2  ;;  %s401_s14 = scalar_lea.vmem %s225_s4, 256  ;;  %p653_p12 = scmp.ne.s32.totalorder %s647_s21, 0 }
  0x38   : > { %p402_p11 = scmp.ne.s32.totalorder %s225_s4, %s401_s14  ;;  %s470_s13 = smov [#allocation5]  }
  0x39   : > { %s405_s16 = sshll.u32 %s470_s13, 4  ;;  %s406_s16 = int_to_ptr.vmem [resolvable:$false] %s405_s16 }
  0x3a   : > { %361 = vset.pattern.permute.xlu1 %v469_v5  ;;  %p403_p13 = pnand %p402_p11, %p653_p12  ;;  %s407_s17 = scalar_lea.vmem %s406_s16, 512 }
  0x3b   : > { %188 = vperm.xlu1 %361, %v162_v3   ;;  %p408_p3 = scmp.lt.s32.totalorder %s225_s4, %s406_s16  ;;  %p409_p5 = scmp.lt.s32.totalorder %s407_s17, %s401_s14 }
  0x3c   : > { %p404_p1 = pneg %p403_p13 }
  0x3d   : > { %p410_p8 = por %p409_p5, %p408_p3 }
  0x3f   : > { %p411_p10 = pnand %p410_p8, %p404_p1 }
  0xb1   : > { %v183_v16 = vpop.permute.xlu1 %182 }
  0xb6   : > { %v189_v20 = vpop.permute.xlu1 %188 }
  0xc0   : > { %v165_v6 = vpop.xlane.xlu0 %164 }
  0xc1   : > { %v167_v7 = vmul.f32 0.00390625, %v165_v6 }
  0xc3   : > { %v168_v8 = vsub.f32 %v160_v0, %v167_v7  ;;  %v169_v9 = vsub.f32 %v161_v1, %v167_v7 }
  0xc5   : > { %v170_v10 = vmul.f32 %v168_v8, %v168_v8  ;;  %v171_v11 = vmul.f32 %v169_v9, %v169_v9 }
  0xc7   : > { %v172_v12 = vadd.f32 %v171_v11, %v170_v10 }
  0xc9   : > { %173 = vadd.xlane.f32.xlu0 %v172_v12 }
 0x152   : > { %v174_v13 = vpop.xlane.xlu0 %173 }
 0x153   : > { %v175_v14 = vmul.f32 0.00390625, %v174_v13 }
 0x155   : > { %v176_v15 = vadd.f32 1e-05, %v175_v14 }
 0x157   : > { %363 = vrsqrt.f32 %v176_v15 }
 0x164   : > { %v364_v17 = vpop.eup %363 }
 0x165   : > { %v178_v18 = vmul.f32 %v364_v17, %v168_v8  ;;  %v179_v19 = vmul.f32 %v364_v17, %v169_v9 }
 0x167   : > { %v185_v21 = vmul.f32 %v183_v16, %v178_v18  ;;  %v186_v22 = vmul.f32 %v183_v16, %v179_v19 }
 0x169   : > { %v191_v23 = vadd.f32 %v189_v20, %v185_v21  ;;  %v192_v24 = vadd.f32 %v189_v20, %v186_v22 }
 0x16b   : > { %v303_v25 = vmul.f32 -1.442695, %v191_v23  ;;  %v304_v26 = vmul.f32 -1.442695, %v192_v24 }
 0x16d   : > { %365 = vpow2.f32 %v303_v25 }
 0x16e   : > { %367 = vpow2.f32 %v304_v26 }
 0x17a   : > { %v366_v27 = vpop.eup %365 }
 0x17b   : > { %v368_v28 = vpop.eup %367  ;;  %v199_v29 = vadd.f32 1.0, %v366_v27 }
 0x17c   : > { %v200_v30 = vadd.f32 1.0, %v368_v28 }
 0x17d   : > { %369 = vrcp.f32 %v199_v29 }
 0x17e   : > { %371 = vrcp.f32 %v200_v30 }
 0x18a   : > { %v370_v31 = vpop.eup %369 }
 0x18b   : > { %v372_v32 = vpop.eup %371  ;;  %v205_v33 = vmul.f32 %v370_v31, %v191_v23 }
 0x18c   : > { %v206_v34 = vmul.f32 %v372_v32, %v192_v24 }
 0x18d   : > { %207 = vst [vmem:[%s159_s3] sm:$0xff] %v205_v33 }
 0x18e   : > { %208 = vst [vmem:[%s159_s3 + $0x8] sm:$0xff] %v206_v34 }
 0x18f   : > { %414 = shalt.err (!%p411_p10)
}
 0x190   : > { %s415_s19 = scalar_lea.hbm %s603_s7, 256  ;;  %s419_s25 = scalar_lea.hbm %s642_s2, 512 }
 0x191   : > { %p416_p2 = scmp.ne.s32.totalorder %s603_s7, %s415_s19  ;;  %p420_p7 = scmp.lt.s32.totalorder %s603_s7, %s642_s2 }
 0x192   : > { %p421_p0 = scmp.lt.s32.totalorder %s419_s25, %s415_s19 }
 0x193   : > { %p417_p4 = pnand %p416_p2, %p653_p12 }
 0x194   : > { %p422_p6 = por %p421_p0, %p420_p7 }
 0x195   : > { %p418_p9 = pneg %p417_p4 }
 0x197   : > { %p423_p11 = pnand %p422_p6, %p418_p9 }
 0x199   : > { %426 = shalt.err (!%p423_p11)
}
 0x19a   : > { %314 = dma.vmem_to_hbm [thread:$0]  (%p653_p12), %s225_s4, 256, %s603_s7, %s210_s8  }
 0x19b PF: > { %s236_s29 = sand.u32 1, %s453_s9   ;;  %p654_p13 = scmp.ne.s32.totalorder %s648_s22, 0 }
 0x19c   : > { %p655_p1 = scmp.ge.s32.totalorder %s465_s12, 2  ;;  %s237_s28 = scalar_lea.sflag [#allocation4], %s236_s29 }
 0x19e   : > { %p321_p3 = pnand %p655_p1, %p654_p13 }
 0x1a0   : > { %p322_p5 = pneg %p321_p3 }
 0x1a2   : > { %448 = dma.done.wait (%p322_p5), %s237_s28, 256  }
 0x1a3   : > { %450 = vsyncadd (%p322_p5), %s237_s28, 4294967040  ;;  %p15_p8 = scmp.ge.s32.totalorder %s511_s15, 4   ;;  %s656_s9 = smov %s457_s10 }
 0x1a4   : > { %s657_s10 = smov %s461_s11  ;;  %s658_s11 = smov %s523_s18 }
 0x1a5   : > { %s659_s12 = smov %s511_s15  ;;  %17 = sbr.rel (!%p15_p8) target bundleno = 5 (0x5), region = 73 }
 0x1aa   :  { %242 = vsyncpa [#allocation3], 1 }
 0x1ab   :  { %244 = vsyncpa [#allocation3 + $0x1], 1 }
 0x1ac   :  { %245 = vsyncpa [#allocation4], 1 }
 0x1ad   :  { %247 = vsyncpa [#allocation4 + $0x1], 1 }

</bundles_post_ra>
